<compile_context>
chip_gen: v5e
topology: v5e:2x2
jax: 0.10.0
libtpu: 0.0.40
codegen_flags: <defaults>
</compile_context>

<pallas_src>
import functools

import jax
import jax.numpy as jnp
from jax.experimental import pallas as pl
from jax.experimental.pallas import tpu as pltpu

ALPHA = 0.05             # module default
LANES = 128
SUBLANES = 8
MAX_BLOCK_ROWS = 8192    # (8192,128) f32 tile = 4 MiB
SPLIT_ROWS_THRESHOLD = 1024  # >= ~128K elems: split across 2 TCs (helps v7x)


def _round_up(x, m):
    return ((x + m - 1) // m) * m


def _bce_blur_kernel(pred_ref, true_ref, out_ref, *,
                     inv_alpha, blocks_per_part, block_elems, n_valid,
                     total_elems):
    c = pl.program_id(0)   # TensorCore partial ("parallel")
    i = pl.program_id(1)   # streaming block within the partial ("arbitrary")

    @pl.when(i == 0)
    def _():
        out_ref[...] = jnp.zeros_like(out_ref)

    x = pred_ref[...].astype(jnp.float32)
    t = true_ref[...].astype(jnp.float32)

    # Numerically-stable BCE with logits (matches torch.nn.BCEWithLogitsLoss):
    #   max(x, 0) - x*t + log1p(exp(-|x|))
    e = jnp.exp(-jnp.abs(x))                       # reused below for sigmoid
    loss = jnp.maximum(x, 0.0) - x * t + jnp.log1p(e)

    # sigmoid(x) without a second exp:  x>=0 -> 1/(1+e),  x<0 -> e/(1+e)
    # TODO(synk): pl.reciprocal(1+e, approx=True) would drop the Newton-Raphson
    # VALU refinement (v7x compute-bound win) but the ~1e-3 rcp error is
    # amplified by exp((dx-1)*~20); kept exact to preserve module numerics.
    r = 1.0 / (1.0 + e)
    p = jnp.where(x >= 0.0, r, e * r)

    dx = p - t
    loss = loss * (1.0 - jnp.exp((dx - 1.0) * inv_alpha))

    def _accumulate(v):
        # Fold (block_rows,128) onto the resident (8,128) output accumulator:
        # pure VALU adds, no cross-lane/XLU work, ~4 KiB of acc traffic/step.
        out_ref[...] += v.reshape(-1, SUBLANES, LANES).sum(axis=0)

    if total_elems == n_valid:
        # No padding anywhere: plain accumulate on every step.
        _accumulate(loss)
    else:
        # Padding lives only in global blocks >= first_masked (static int).
        first_masked = n_valid // block_elems
        gb = c * blocks_per_part + i            # global block index (traced)

        @pl.when(gb < first_masked)
        def _():
            _accumulate(loss)

        @pl.when(gb >= first_masked)
        def _():
            rows = jax.lax.broadcasted_iota(jnp.int32, loss.shape, 0)
            cols = jax.lax.broadcasted_iota(jnp.int32, loss.shape, 1)
            # <= 0 for fully padded blocks; assumes n_valid < 2**31.
            valid = n_valid - gb * block_elems
            mask = (rows * LANES + cols) < valid
            _accumulate(jnp.where(mask, loss, 0.0))


def bce_blur_with_logits_loss(pred, true, alpha=ALPHA, *,
                              max_block_rows=MAX_BLOCK_ROWS,
                              split_rows_threshold=SPLIT_ROWS_THRESHOLD):
    """pred, true: same shape (e.g. NCHW), any float dtype. Returns scalar f32."""
    assert pred.shape == true.shape
    n = int(pred.size)
    assert n > 0

    # ---- block geometry (all static Python ints) ----
    itemsizes = (jnp.dtype(pred.dtype).itemsize, jnp.dtype(true.dtype).itemsize)
    row_align = max(32 // it for it in itemsizes)   # 8 f32 / 16 bf16 / 32 i8
    rows_needed = -(-n // LANES)
    num_parts = 2 if rows_needed >= split_rows_threshold else 1
    rows_per_part = -(-rows_needed // num_parts)
    block_rows = min(_round_up(max_block_rows, row_align),
                     _round_up(rows_per_part, row_align))
    blocks_per_part = -(-rows_per_part // block_rows)
    total_rows = num_parts * blocks_per_part * block_rows
    total_elems = total_rows * LANES
    block_elems = block_rows * LANES

    # Keep native dtype (reshape of contiguous data is free); pad only when
    # the element count is not tile-divisible (padding is masked in-kernel).
    pred_f = pred.reshape(-1)
    true_f = true.reshape(-1)
    if total_elems != n:
        pred_f = jnp.pad(pred_f, (0, total_elems - n))
        true_f = jnp.pad(true_f, (0, total_elems - n))
    pred2d = pred_f.reshape(total_rows, LANES)
    true2d = true_f.reshape(total_rows, LANES)

    kernel = functools.partial(
        _bce_blur_kernel,
        inv_alpha=1.0 / (alpha + 1e-4),
        blocks_per_part=blocks_per_part,
        block_elems=block_elems,
        n_valid=n,
        total_elems=total_elems,
    )

    # 2 inputs x 2 pipeline buffers + headroom for outputs/temporaries.
    in_block_bytes = block_rows * LANES * sum(itemsizes)
    vmem_limit = int(2 * in_block_bytes + (8 << 20))

    partials = pl.pallas_call(
        kernel,
        out_shape=jax.ShapeDtypeStruct((num_parts * SUBLANES, LANES),
                                       jnp.float32),
        grid_spec=pltpu.PrefetchScalarGridSpec(
            num_scalar_prefetch=0,
            grid=(num_parts, blocks_per_part),
            in_specs=[
                pl.BlockSpec((block_rows, LANES),
                             lambda c, i: (c * blocks_per_part + i, 0)),
                pl.BlockSpec((block_rows, LANES),
                             lambda c, i: (c * blocks_per_part + i, 0)),
            ],
            # Lane-dense per-part partial; resident accumulator across axis 1.
            out_specs=pl.BlockSpec((SUBLANES, LANES), lambda c, i: (c, 0)),
        ),
        compiler_params=pltpu.CompilerParams(
            dimension_semantics=("parallel", "arbitrary"),
            vmem_limit_bytes=vmem_limit,
        ),
    )(pred2d, true2d)

    # Tiny cross-part / cross-lane reduction + mean, done once in XLA.
    return jnp.sum(partials) * jnp.float32(1.0 / n)


def _reference(pred, true, alpha=ALPHA):
    x = pred.astype(jnp.float32)
    t = true.astype(jnp.float32)
    loss = jnp.maximum(x, 0.0) - x * t + jnp.log1p(jnp.exp(-jnp.abs(x)))
    p = jax.nn.sigmoid(x)
    dx = p - t
    loss = loss * (1.0 - jnp.exp((dx - 1.0) / (alpha + 1e-4)))
    return jnp.mean(loss)


def _check(out, ref, name):
    assert jnp.allclose(out, ref, rtol=1e-5, atol=1e-5), (name, out, ref)


if __name__ == "__main__":
    key = jax.random.PRNGKey(0)
    k1, k2, k3, k4, k5, k6 = jax.random.split(key, 6)

    # 1) Main test: YOLO-style prediction map, NCHW (2, 4, 16, 16).
    pred = jax.random.normal(k1, (2, 4, 16, 16), dtype=jnp.float32)
    true = (jax.random.uniform(k2, (2, 4, 16, 16)) > 0.5).astype(jnp.float32)
    out = jax.block_until_ready(bce_blur_with_logits_loss(pred, true))
    _check(out, _reference(pred, true), "main")

    # 2) Non-tile-divisible size exercises the masked-tail path.
    pred2 = jax.random.normal(k3, (3, 5, 7, 11), dtype=jnp.float32)
    true2 = (jax.random.uniform(k4, (3, 5, 7, 11)) > 0.5).astype(jnp.float32)
    out2 = jax.block_until_ready(bce_blur_with_logits_loss(pred2, true2))
    _check(out2, _reference(pred2, true2), "masked_tail")

    # 3) Force the 2-part x multi-block path (small override tile sizes) to
    #    validate the cross-core split, global block indexing and tail mask.
    pred3 = jax.random.normal(k5, (2, 3, 33, 40), dtype=jnp.float32)
    true3 = (jax.random.uniform(k6, (2, 3, 33, 40)) > 0.5).astype(jnp.float32)
    out3 = jax.block_until_ready(
        bce_blur_with_logits_loss(pred3, true3,
                                  max_block_rows=16, split_rows_threshold=16))
    _check(out3, _reference(pred3, true3), "two_parts")

    # 4) bf16 inputs exercise the 16-row sublane-packed alignment path.
    pred4 = pred.astype(jnp.bfloat16)
    true4 = true.astype(jnp.bfloat16)
    out4 = jax.block_until_ready(bce_blur_with_logits_loss(pred4, true4))
    _check(out4, _reference(pred4, true4), "bf16")

    print("KERNEL_OK")
</pallas_src>

<mosaic_0001>
module attributes {stable_mosaic.version = 11 : i64} {
  func.func @_bce_blur_kernel(%arg0: i32, %arg1: i32, %arg2: memref<16x128xf32, #tpu.memory_space<vmem>>, %arg3: memref<16x128xf32, #tpu.memory_space<vmem>>, %arg4: memref<8x128xf32, #tpu.memory_space<vmem>>) attributes {dimension_semantics = [#tpu.dimension_semantics<parallel>, #tpu.dimension_semantics<arbitrary>], iteration_bounds = array<i64: 1, 1>, scalar_prefetch = 0 : i64, scratch_operands = 0 : i64, tpu.core_type = #tpu.core_type<tc>, window_params = [{transform_indices = @transform_0, window_bounds = array<i64: 16, 128>}, {transform_indices = @transform_1, window_bounds = array<i64: 16, 128>}, {transform_indices = @transform_2, window_bounds = array<i64: 8, 128>}]} {
    %c0_i32 = arith.constant 0 : i32
    %0 = arith.cmpi eq, %arg1, %c0_i32 : i32
    %1 = arith.extui %0 : i1 to i32
    %c0_i32_0 = arith.constant 0 : i32
    %2 = arith.cmpi ne, %1, %c0_i32_0 : i32
    scf.if %2 {
      %cst_16 = arith.constant 0.000000e+00 : f32
      %37 = vector.broadcast %cst_16 : f32 to vector<8x128xf32>
      %c0_17 = arith.constant 0 : index
      %c0_18 = arith.constant 0 : index
      %38 = vector.load %arg4[%c0_17, %c0_18] : memref<8x128xf32, #tpu.memory_space<vmem>>, vector<8x128xf32>
      tpu.vector_store %arg4[%c0_17, %c0_18], %37 {strides = array<i32>} : memref<8x128xf32, #tpu.memory_space<vmem>>, vector<8x128xf32>,
    } else {
    }
    %c0 = arith.constant 0 : index
    %c0_1 = arith.constant 0 : index
    %3 = vector.load %arg2[%c0, %c0_1] : memref<16x128xf32, #tpu.memory_space<vmem>>, vector<16x128xf32>
    %c0_2 = arith.constant 0 : index
    %c0_3 = arith.constant 0 : index
    %4 = vector.load %arg3[%c0_2, %c0_3] : memref<16x128xf32, #tpu.memory_space<vmem>>, vector<16x128xf32>
    %5 = math.absf %3 : vector<16x128xf32>
    %cst = arith.constant 0.000000e+00 : f32
    %6 = vector.broadcast %cst : f32 to vector<16x128xf32>
    %7 = arith.subf %6, %5 : vector<16x128xf32>
    %8 = math.exp %7 : vector<16x128xf32>
    %cst_4 = arith.constant 0.000000e+00 : f32
    %9 = vector.broadcast %cst_4 : f32 to vector<16x128xf32>
    %10 = arith.maximumf %3, %9 : vector<16x128xf32>
    %11 = arith.mulf %3, %4 : vector<16x128xf32>
    %12 = arith.subf %10, %11 : vector<16x128xf32>
    %13 = math.log1p %8 : vector<16x128xf32>
    %14 = arith.addf %12, %13 : vector<16x128xf32>
    %cst_5 = arith.constant 1.000000e+00 : f32
    %15 = vector.broadcast %cst_5 : f32 to vector<16x128xf32>
    %16 = arith.addf %15, %8 : vector<16x128xf32>
    %cst_6 = arith.constant 1.000000e+00 : f32
    %17 = vector.broadcast %cst_6 : f32 to vector<16x128xf32>
    %18 = arith.divf %17, %16 : vector<16x128xf32>
    %cst_7 = arith.constant 0.000000e+00 : f32
    %19 = vector.broadcast %cst_7 : f32 to vector<16x128xf32>
    %20 = arith.cmpf oge, %3, %19 : vector<16x128xf32>
    %21 = arith.mulf %8, %18 : vector<16x128xf32>
    %22 = arith.select %20, %18, %21 : vector<16x128xi1>, vector<16x128xf32>
    %23 = arith.subf %22, %4 : vector<16x128xf32>
    %cst_8 = arith.constant 1.000000e+00 : f32
    %24 = vector.broadcast %cst_8 : f32 to vector<16x128xf32>
    %25 = arith.subf %23, %24 : vector<16x128xf32>
    %cst_9 = arith.constant 19.9600792 : f32
    %26 = vector.broadcast %cst_9 : f32 to vector<16x128xf32>
    %27 = arith.mulf %25, %26 : vector<16x128xf32>
    %28 = math.exp %27 : vector<16x128xf32>
    %cst_10 = arith.constant 1.000000e+00 : f32
    %29 = vector.broadcast %cst_10 : f32 to vector<16x128xf32>
    %30 = arith.subf %29, %28 : vector<16x128xf32>
    %31 = arith.mulf %14, %30 : vector<16x128xf32>
    %c0_11 = arith.constant 0 : index
    %c0_12 = arith.constant 0 : index
    %32 = vector.load %arg4[%c0_11, %c0_12] : memref<8x128xf32, #tpu.memory_space<vmem>>, vector<8x128xf32>
    %33 = vector.shape_cast %31 : vector<16x128xf32> to vector<2x8x128xf32>
    %cst_13 = arith.constant dense<0.000000e+00> : vector<8x128xf32>
    %34 = vector.multi_reduction <add>, %33, %cst_13 [0] : vector<2x8x128xf32> to vector<8x128xf32>
    %35 = arith.addf %32, %34 : vector<8x128xf32>
    %c0_14 = arith.constant 0 : index
    %c0_15 = arith.constant 0 : index
    %36 = vector.load %arg4[%c0_14, %c0_15] : memref<8x128xf32, #tpu.memory_space<vmem>>, vector<8x128xf32>
    tpu.vector_store %arg4[%c0_14, %c0_15], %35 {strides = array<i32>} : memref<8x128xf32, #tpu.memory_space<vmem>>, vector<8x128xf32>,
    return
  }
  func.func @transform_0(%arg0: i32, %arg1: i32) -> (i32, i32) {
    %c1_i32 = arith.constant 1 : i32
    %0 = arith.muli %arg0, %c1_i32 : i32
    %1 = arith.addi %0, %arg1 : i32
    %c0_i32 = arith.constant 0 : i32
    %c0_i32_0 = arith.constant 0 : i32
    return %1, %c0_i32 : i32, i32
  }
  func.func @transform_1(%arg0: i32, %arg1: i32) -> (i32, i32) {
    %c1_i32 = arith.constant 1 : i32
    %0 = arith.muli %arg0, %c1_i32 : i32
    %1 = arith.addi %0, %arg1 : i32
    %c0_i32 = arith.constant 0 : i32
    %c0_i32_0 = arith.constant 0 : i32
    return %1, %c0_i32 : i32, i32
  }
  func.func @transform_2(%arg0: i32, %arg1: i32) -> (i32, i32) {
    %c0_i32 = arith.constant 0 : i32
    %c0_i32_0 = arith.constant 0 : i32
    return %arg0, %c0_i32 : i32, i32
  }
}

</mosaic_0001>

<bundles_post_ra>
// kernel: tpu_custom_call.1
= control target key start
LH: loop header
LB: loop body
LE: loop exit
PB: predicated region body
PF: predicated region fallthrough
CT: control target
= control target key end

     0   :  { %7 = vsyncpa [#allocation3], 0  ;;  %s330_s0 = inlined_call_operand.hbm [shape: f32[16,128], index: 0, kind: input, shape index: {}]   ;;  %s331_s1 = inlined_call_operand.hbm [shape: f32[16,128], index: 1, kind: input, shape index: {}]   ;;  %s332_s2 = inlined_call_operand.hbm [shape: f32[8,128], index: 2, kind: output, shape index: {}]  }
   0x1   :  { %8 = vsyncpa [#allocation6], 0 }
   0x2   :  { %9 = vsyncpa [#allocation4], 0  ;;  %s18_s11 = sshll.u32 %s330_s0, 4  ;;  %s275_s12 = smov [#allocation2]   ;;  %s19_s11 = int_to_ptr.hbm [resolvable:$true] %s18_s11 }
   0x3   :  { %s20_s13 = sshll.u32 %s275_s12, 4  ;;  %s35_s16 = sshll.u32 %s331_s1, 4  ;;  %s21_s13 = int_to_ptr.vmem [resolvable:$true] %s20_s13  ;;  %s36_s16 = int_to_ptr.hbm [resolvable:$true] %s35_s16 }
   0x4   :  { %s276_s17 = smov 128   ;;  %s277_s18 = smov 8  }
   0x5   :  { %26 = dma.hbm_to_vmem [thread:$0]  %s19_s11, 256, %s21_s13, [#allocation3], %s276_s17, %s276_s17, %s277_s18  }
   0x6   :  { %s278_s19 = smov [#allocation5]  }
   0x7   :  { %s37_s20 = sshll.u32 %s278_s19, 4  ;;  %s38_s20 = int_to_ptr.vmem [resolvable:$true] %s37_s20 }
   0x8   :  { %43 = dma.hbm_to_vmem [thread:$0]  %s36_s16, 256, %s38_s20, [#allocation6], %s276_s17, %s276_s17, %s277_s18  }
   0x9   :  { %269 = dma.done.wait [#allocation3], 256  }
   0xa   :  { %270 = vsyncadd [#allocation3], 4294967040 }
   0xb   :  { %271 = dma.done.wait [#allocation6], 256  }
   0xc   :  { %272 = vsyncadd [#allocation6], 4294967040  ;;  %v301_v0 = vld [vmem:[#allocation2] sm:$0xff]  ;;  %v303_v1 = vld [vmem:[#allocation2 + $0x8] sm:$0xff]  ;;  %s279_s0 = smov [#allocation7]   ;;  %s162_s23 = sshll.u32 %s332_s2, 4  ;;  %s163_s23 = int_to_ptr.hbm [resolvable:$true] %s162_s23 }
   0xd   :  { %v65_v2 = vand.u32 2147483647, %v301_v0  ;;  %v66_v3 = vand.u32 2147483647, %v303_v1  ;;  %vm131_vm8 = vcmp.ge.f32.partialorder %v301_v0, 0.0  ;;  %v63_v31 = vld [vmem:[#allocation5] sm:$0xff] }
   0xe   :  { %vm132_vm9 = vcmp.ge.f32.partialorder %v303_v1, 0.0  ;;  %v64_v34 = vld [vmem:[#allocation5 + $0x8] sm:$0xff]  ;;  %v73_v51 = vmax.f32 %v301_v0, 0.0  ;;  %v74_v52 = vmax.f32 %v303_v1, 0.0  ;;  %v75_v53 = vmul.f32 %v63_v31, %v301_v0  ;;  %s160_s1 = sshll.u32 %s279_s0, 4  ;;  %s161_s1 = int_to_ptr.vmem [resolvable:$true] %s160_s1 }
   0xf   :  { %v67_v4 = vsub.f32 0.0, %v65_v2  ;;  %v68_v5 = vsub.f32 0.0, %v66_v3  ;;  %v76_v55 = vmul.f32 %v64_v34, %v303_v1 }
  0x10   :  { %v77_v62 = vsub.f32 %v73_v51, %v75_v53 }
  0x11   :  { %v69_v6 = vmul.f32 1.442695, %v67_v4  ;;  %v71_v7 = vmul.f32 1.442695, %v68_v5  ;;  %v78_v63 = vsub.f32 %v74_v52, %v76_v55 }
  0x13   :  { %181 = vpow2.f32 %v69_v6 }
  0x14   :  { %183 = vpow2.f32 %v71_v7 }
  0x19   :  { %v307_v8 = vpop.eup %181 }
  0x1a   :  { %v309_v9 = vpop.eup %183  ;;  %v79_v10 = vadd.f32 1.0, %v307_v8  ;;  %v82_v35 = vmul.f32 -0.5, %v307_v8  ;;  %v85_v45 = vand.u32 2147483647, %v307_v8 }
  0x1b   :  { %v88_v11 = vadd.f32 1.0, %v309_v9  ;;  %v91_v37 = vmul.f32 -0.5, %v309_v9  ;;  %v94_v49 = vand.u32 2147483647, %v309_v9 }
  0x1c   :  { %185 = vrcp.f32 %v79_v10  ;;  %vm106_vm0 = vweird.f32 %v79_v10  ;;  %v112_v15 = vand.u32 2147483648, %v79_v10  ;;  %v110_v18 = vand.u32 2147483647, %v79_v10 }
  0x1d   :  { %187 = vrcp.f32 %v88_v11  ;;  %v127_v19 = vand.u32 2147483648, %v88_v11  ;;  %vm121_vm2 = vweird.f32 %v88_v11  ;;  %v125_v21 = vand.u32 2147483647, %v88_v11 }
  0x1e   :  { %v113_v23 = vor.u32 1.1754944e-38, %v112_v15  ;;  %vm111_vm5 = vcmp.eq.f32.partialorder %v110_v18, 8.507059e+37  ;;  %189 = vlog2.f32 %v79_v10  ;;  %v83_v42 = vadd.f32 1.0, %v82_v35 }
  0x1f   :  { %v128_v26 = vor.u32 1.1754944e-38, %v127_v19  ;;  %vm126_vm7 = vcmp.eq.f32.partialorder %v125_v21, 8.507059e+37  ;;  %191 = vlog2.f32 %v88_v11  ;;  %v92_v46 = vadd.f32 1.0, %v91_v37 }
  0x20   :  { %v84_v57 = vmul.f32 %v307_v8, %v83_v42  ;;  %vm86_vm10 = vcmp.lt.f32.partialorder %v85_v45, 0.0004427343  ;;  %vm95_vm11 = vcmp.lt.f32.partialorder %v94_v49, 0.0004427343 }
  0x21   :  { %v93_v60 = vmul.f32 %v309_v9, %v92_v46 }
  0x22   :  { %v186_v12 = vpop.eup %185 }
  0x23   :  { %v188_v13 = vpop.eup %187  ;;  %v102_v14 = vmul.f32 %v186_v12, %v79_v10  ;;  %vm107_vm1 = vweird.f32 %v186_v12 }
  0x24   :  { %v117_v16 = vmul.f32 %v188_v13, %v88_v11  ;;  %vm122_vm3 = vweird.f32 %v188_v13  ;;  %vm108_vm4 = vmor %vm106_vm0, %vm107_vm1  ;;  %v190_v44 = vpop.eup %189 }
  0x25   :  { %v103_v17 = vsub.f32 1.0, %v102_v14  ;;  %vm123_vm6 = vmor %vm121_vm2, %vm122_vm3  ;;  %v192_v48 = vpop.eup %191  ;;  %v81_v56 = vmul.f32 0.6931472, %v190_v44 }
  0x26   :  { %v118_v20 = vsub.f32 1.0, %v117_v16  ;;  %v90_v59 = vmul.f32 0.6931472, %v192_v48 }
  0x27   :  { %v104_v22 = vmul.f32 %v186_v12, %v103_v17  ;;  %v87_v2 = vsel %vm86_vm10, %v84_v57, %v81_v56 }
  0x28   :  { %v119_v24 = vmul.f32 %v188_v13, %v118_v20  ;;  %v96_v3 = vsel %vm95_vm11, %v93_v60, %v90_v59  ;;  %v97_v0 = vadd.f32 %v87_v2, %v77_v62 }
  0x29   :  { %v105_v25 = vadd.f32 %v186_v12, %v104_v22  ;;  %v98_v5 = vadd.f32 %v96_v3, %v78_v63 }
  0x2a   :  { %v120_v27 = vadd.f32 %v188_v13, %v119_v24 }
  0x2b   :  { %v109_v28 = vsel %vm108_vm4, %v186_v12, %v105_v25 }
  0x2c   :  { %v114_v29 = vsel %vm111_vm5, %v113_v23, %v109_v28  ;;  %v124_v30 = vsel %vm123_vm6, %v188_v13, %v120_v27 }
  0x2d   :  { %v129_v32 = vsel %vm126_vm7, %v128_v26, %v124_v30  ;;  %v133_v33 = vmul.f32 %v307_v8, %v114_v29 }
  0x2e   :  { %v134_v36 = vmul.f32 %v309_v9, %v129_v32 }
  0x2f   :  { %v135_v38 = vsel %vm131_vm8, %v114_v29, %v133_v33 }
  0x30   :  { %v136_v39 = vsel %vm132_vm9, %v129_v32, %v134_v36  ;;  %v137_v40 = vsub.f32 %v135_v38, %v63_v31 }
  0x31   :  { %v138_v41 = vsub.f32 %v136_v39, %v64_v34 }
  0x32   :  { %v173_v43 = vadd.f32 -1.0, %v137_v40 }
  0x33   :  { %v174_v47 = vadd.f32 -1.0, %v138_v41 }
  0x34   :  { %v141_v50 = vmul.f32 19.96008, %v173_v43 }
  0x35   :  { %v142_v54 = vmul.f32 19.96008, %v174_v47 }
  0x36   :  { %v143_v58 = vmul.f32 1.442695, %v141_v50 }
  0x37   :  { %v145_v61 = vmul.f32 1.442695, %v142_v54 }
  0x38   :  { %193 = vpow2.f32 %v143_v58 }
  0x39   :  { %195 = vpow2.f32 %v145_v61 }
  0x3e   :  { %v194_v4 = vpop.eup %193 }
  0x3f   :  { %v196_v1 = vpop.eup %195  ;;  %v147_v6 = vsub.f32 1.0, %v194_v4 }
  0x40   :  { %v148_v7 = vsub.f32 1.0, %v196_v1 }
  0x41   :  { %v149_v8 = vmul.f32 %v147_v6, %v97_v0 }
  0x42   :  { %v150_v10 = vmul.f32 %v148_v7, %v98_v5 }
  0x44   :  { %v152_v9 = vadd.f32 %v150_v10, %v149_v8 }
  0x46   :  { %154 = vst [vmem:[#allocation7] sm:$0xff] %v152_v9 }
  0x47   :  { %165 = dma.vmem_to_hbm [thread:$0]  %s161_s1, 128, %s163_s23, [#allocation4]  }
  0x48   :  { %273 = dma.done.wait [#allocation4], 128  }
  0x49   :  { %274 = vsyncadd [#allocation4], 4294967168 }
  0x4a   :  { %170 = vsyncpa [#allocation3], 1 }
  0x4b   :  { %171 = vsyncpa [#allocation6], 1 }
  0x4c   :  { %172 = vsyncpa [#allocation4], 1 }

</bundles_post_ra>
